<compile_context>
chip_gen: v7x
topology: tpu7x:2x2x1
jax: 0.10.0
libtpu: 0.0.40
codegen_flags: <defaults>
</compile_context>

<pallas_src>
import functools

import jax
import jax.numpy as jnp
from jax.experimental import pallas as pl
from jax.experimental.pallas import tpu as pltpu


def _lateral_kernel(x_ref, h1_ref, h2_ref, w1_ref, w2_ref, b_ref, o_ref, *,
                    inv_num):
    """Fused lateral-connection hot path for 2 source layers (NCHW-native).

    Per grid step (one batch element, one spatial tile T):
      x_ref : (C_out, T)     target-layer input tile (T on the lane axis)
      h*_ref: (C_in_*, T)    recorded source-activation tiles
      w*_ref: (C_out, C_in_*) 1x1-conv weights, pre-scaled by 1/num_connections
      b_ref : (C_out, 1)     combined bias, pre-scaled by 1/num_connections
      o_ref : (C_out, T)
    """
    acc = x_ref[...].astype(jnp.float32) * inv_num
    acc = acc + jnp.dot(w1_ref[...], h1_ref[...],
                        preferred_element_type=jnp.float32)
    acc = acc + jnp.dot(w2_ref[...], h2_ref[...],
                        preferred_element_type=jnp.float32)
    acc = acc + b_ref[...]                       # (C_out, 1) broadcast over lanes
    o_ref[...] = acc.astype(o_ref.dtype)


def _pick_tile_hw(hw, bytes_per_col, budget_bytes=16 << 20):
    """Largest lane-dense spatial tile whose double-buffered streamed traffic
    stays within `budget_bytes` (conservative vs. the 32 MiB scoped VMEM
    default and v7x's 64 MiB physical VMEM)."""
    t = budget_bytes // max(1, 2 * bytes_per_col)   # 2x for double buffering
    t = max(128, (t // 128) * 128)
    t = min(t, 8192)
    if hw <= t:
        return hw          # full dim: always a legal block shape
    return t               # multiple of 128: legal block shape


def lateral_connection(x, records, conv_weights, conv_biases, *, tile_hw=None):
    """x: NCHW target input; records: list of NCHW source activations;
    conv_weights[i]: (C_out, C_in_i, 1, 1); conv_biases[i]: (C_out,).
    Returns NCHW output with the same shape/dtype as x."""
    assert len(records) == 2, "this kernel instantiation fuses 2 lateral layers"
    num_connections = len(records) + 1
    inv_num = 1.0 / float(num_connections)

    N, C_out, H, W = x.shape
    HW = H * W
    C1 = records[0].shape[1]
    C2 = records[1].shape[1]

    # NCHW -> (N, C, H*W): pure reshape (no data movement); H*W lands on the
    # fast lane axis, so every load/store is lane-dense and the 1x1 convs are
    # (C_out, C_in) @ (C_in, T) matmuls with a wide output N dimension.
    x_r = x.reshape(N, C_out, HW)
    h1_r = records[0].reshape(N, C1, HW)
    h2_r = records[1].reshape(N, C2, HW)

    # Fold 1/num_connections into the tiny constant weights and combine the
    # biases:  out = x*inv + (W1*inv)@h1 + (W2*inv)@h2 + (b1+b2)*inv.
    w1 = (conv_weights[0][:, :, 0, 0] * inv_num).astype(jnp.float32)   # (C_out, C1)
    w2 = (conv_weights[1][:, :, 0, 0] * inv_num).astype(jnp.float32)   # (C_out, C2)
    b = ((conv_biases[0] + conv_biases[1]) * inv_num)\
        .reshape(C_out, 1).astype(jnp.float32)                         # (C_out, 1)

    if tile_hw is None:
        bytes_per_col = x.dtype.itemsize * (2 * C_out + C1 + C2)
        tile_hw = _pick_tile_hw(HW, bytes_per_col)

    grid = (N, pl.cdiv(HW, tile_hw))   # no reduction axis -> ragged tail is safe

    kernel = functools.partial(_lateral_kernel, inv_num=inv_num)

    out_r = pl.pallas_call(
        kernel,
        out_shape=jax.ShapeDtypeStruct((N, C_out, HW), x.dtype),
        grid_spec=pltpu.PrefetchScalarGridSpec(
            num_scalar_prefetch=0,
            grid=grid,
            in_specs=[
                pl.BlockSpec((None, C_out, tile_hw), lambda n, j: (n, 0, j)),  # x
                pl.BlockSpec((None, C1, tile_hw), lambda n, j: (n, 0, j)),     # h1
                pl.BlockSpec((None, C2, tile_hw), lambda n, j: (n, 0, j)),     # h2
                pl.BlockSpec((C_out, C1), lambda n, j: (0, 0)),                # w1'
                pl.BlockSpec((C_out, C2), lambda n, j: (0, 0)),                # w2'
                pl.BlockSpec((C_out, 1), lambda n, j: (0, 0)),                 # b'
            ],
            out_specs=pl.BlockSpec((None, C_out, tile_hw), lambda n, j: (n, 0, j)),
        ),
        compiler_params=pltpu.CompilerParams(
            dimension_semantics=("parallel", "parallel"),
            vmem_limit_bytes=32 * 1024 * 1024,
        ),
    )(x_r, h1_r, h2_r, w1, w2, b)

    # (N, C_out, H*W) -> NCHW: pure reshape, no transpose.
    return out_r.reshape(N, C_out, H, W)


def _reference(x, records, conv_weights, conv_biases):
    """Pure-JAX reference reproducing the PyTorch forward."""
    num = len(records) + 1
    out = x / num
    for h, w, b in zip(records, conv_weights, conv_biases):
        # 1x1 conv, NCHW: out[n,co,h,w] = sum_ci W[co,ci]*h[n,ci,h,w] + b[co]
        y = jnp.einsum('oc,nchw->nohw', w[:, :, 0, 0], h) + b[None, :, None, None]
        out = out + y / num
    return out


if __name__ == "__main__":
    key = jax.random.PRNGKey(0)
    k_x, k_h1, k_h2, k_w1, k_b1, k_w2, k_b2 = jax.random.split(key, 7)

    # Small shapes: batch=2, target channels=8, spatial=16x16,
    # two source columns with 8 and 16 channels respectively.
    N, C_out, H, W = 2, 8, 16, 16
    C_in1, C_in2 = 8, 16

    x = jax.random.normal(k_x, (N, C_out, H, W), dtype=jnp.float32)
    h1 = jax.random.normal(k_h1, (N, C_in1, H, W), dtype=jnp.float32)
    h2 = jax.random.normal(k_h2, (N, C_in2, H, W), dtype=jnp.float32)

    # Deterministic Conv2d(C_in, C_out, kernel_size=1) parameter init
    # (uniform in +-1/sqrt(fan_in), like PyTorch's default).
    def conv_init(kw, kb, c_out, c_in):
        bound = 1.0 / jnp.sqrt(float(c_in))
        w = jax.random.uniform(kw, (c_out, c_in, 1, 1), jnp.float32, -bound, bound)
        b = jax.random.uniform(kb, (c_out,), jnp.float32, -bound, bound)
        return w, b

    w1, b1 = conv_init(k_w1, k_b1, C_out, C_in1)
    w2, b2 = conv_init(k_w2, k_b2, C_out, C_in2)

    # TODO(synk): the PyTorch module's name_to_module / forward_record hook
    # plumbing is framework glue with no Pallas equivalent; the recorded
    # activations and lateral 1x1-conv parameters are passed explicitly.
    out = lateral_connection(x, [h1, h2], [w1, w2], [b1, b2])
    out = jax.block_until_ready(out)

    ref = _reference(x, [h1, h2], [w1, w2], [b1, b2])
    assert out.shape == (N, C_out, H, W)
    assert out.dtype == x.dtype
    assert jnp.allclose(out, ref, atol=1e-5, rtol=1e-5), "mismatch vs reference"

    print("KERNEL_OK")
</pallas_src>

<mosaic_0001>
module attributes {stable_mosaic.version = 11 : i64} {
  func.func @_lateral_kernel(%arg0: i32, %arg1: i32, %arg2: memref<1x8x256xf32, #tpu.memory_space<vmem>>, %arg3: memref<1x8x256xf32, #tpu.memory_space<vmem>>, %arg4: memref<1x16x256xf32, #tpu.memory_space<vmem>>, %arg5: memref<8x8xf32, #tpu.memory_space<vmem>>, %arg6: memref<8x16xf32, #tpu.memory_space<vmem>>, %arg7: memref<8x1xf32, #tpu.memory_space<vmem>>, %arg8: memref<1x8x256xf32, #tpu.memory_space<vmem>>) attributes {dimension_semantics = [#tpu.dimension_semantics<parallel>, #tpu.dimension_semantics<parallel>], iteration_bounds = array<i64: 2, 1>, scalar_prefetch = 0 : i64, scratch_operands = 0 : i64, tpu.core_type = #tpu.core_type<tc>, window_params = [{transform_indices = @transform_0, window_bounds = array<i64: 1, 8, 256>}, {transform_indices = @transform_1, window_bounds = array<i64: 1, 8, 256>}, {transform_indices = @transform_2, window_bounds = array<i64: 1, 16, 256>}, {pipeline_mode = #tpu.pipeline_mode<synchronous>, transform_indices = @transform_3, window_bounds = array<i64: 8, 8>}, {pipeline_mode = #tpu.pipeline_mode<synchronous>, transform_indices = @transform_4, window_bounds = array<i64: 8, 16>}, {pipeline_mode = #tpu.pipeline_mode<synchronous>, transform_indices = @transform_5, window_bounds = array<i64: 8, 1>}, {transform_indices = @transform_6, window_bounds = array<i64: 1, 8, 256>}]} {
    %c0 = arith.constant 0 : index
    %c0_0 = arith.constant 0 : index
    %c0_1 = arith.constant 0 : index
    %0 = vector.load %arg2[%c0, %c0_0, %c0_1] : memref<1x8x256xf32, #tpu.memory_space<vmem>>, vector<1x8x256xf32>
    %1 = vector.shape_cast %0 : vector<1x8x256xf32> to vector<8x256xf32>
    %cst = arith.constant 0.333333343 : f32
    %2 = vector.broadcast %cst : f32 to vector<8x256xf32>
    %3 = arith.mulf %1, %2 : vector<8x256xf32>
    %c0_2 = arith.constant 0 : index
    %c0_3 = arith.constant 0 : index
    %4 = vector.load %arg5[%c0_2, %c0_3] : memref<8x8xf32, #tpu.memory_space<vmem>>, vector<8x8xf32>
    %c0_4 = arith.constant 0 : index
    %c0_5 = arith.constant 0 : index
    %c0_6 = arith.constant 0 : index
    %5 = vector.load %arg3[%c0_4, %c0_5, %c0_6] : memref<1x8x256xf32, #tpu.memory_space<vmem>>, vector<1x8x256xf32>
    %6 = vector.shape_cast %5 : vector<1x8x256xf32> to vector<8x256xf32>
    %cst_7 = arith.constant dense<0.000000e+00> : vector<8x256xf32>
    %7 = tpu.matmul %4, %6, %cst_7 {dimension_numbers = #tpu.dot_dimension_numbers<[1], [0], [0], [1], [0, 0, 1, 1], [], []>} : vector<8x8xf32>, vector<8x256xf32>, vector<8x256xf32> -> vector<8x256xf32>
    %8 = arith.addf %3, %7 : vector<8x256xf32>
    %c0_8 = arith.constant 0 : index
    %c0_9 = arith.constant 0 : index
    %9 = vector.load %arg6[%c0_8, %c0_9] : memref<8x16xf32, #tpu.memory_space<vmem>>, vector<8x16xf32>
    %c0_10 = arith.constant 0 : index
    %c0_11 = arith.constant 0 : index
    %c0_12 = arith.constant 0 : index
    %10 = vector.load %arg4[%c0_10, %c0_11, %c0_12] : memref<1x16x256xf32, #tpu.memory_space<vmem>>, vector<1x16x256xf32>
    %11 = vector.shape_cast %10 : vector<1x16x256xf32> to vector<16x256xf32>
    %cst_13 = arith.constant dense<0.000000e+00> : vector<8x256xf32>
    %12 = tpu.matmul %9, %11, %cst_13 {dimension_numbers = #tpu.dot_dimension_numbers<[1], [0], [0], [1], [0, 0, 1, 1], [], []>} : vector<8x16xf32>, vector<16x256xf32>, vector<8x256xf32> -> vector<8x256xf32>
    %13 = arith.addf %8, %12 : vector<8x256xf32>
    %c0_14 = arith.constant 0 : index
    %c0_15 = arith.constant 0 : index
    %14 = vector.load %arg7[%c0_14, %c0_15] : memref<8x1xf32, #tpu.memory_space<vmem>>, vector<8x1xf32>
    %15 = vector.broadcast %14 : vector<8x1xf32> to vector<8x256xf32>
    %16 = arith.addf %13, %15 : vector<8x256xf32>
    %c0_16 = arith.constant 0 : index
    %c0_17 = arith.constant 0 : index
    %c0_18 = arith.constant 0 : index
    %17 = vector.load %arg8[%c0_16, %c0_17, %c0_18] : memref<1x8x256xf32, #tpu.memory_space<vmem>>, vector<1x8x256xf32>
    %18 = vector.shape_cast %17 : vector<1x8x256xf32> to vector<8x256xf32>
    %19 = vector.shape_cast %16 : vector<8x256xf32> to vector<1x8x256xf32>
    tpu.vector_store %arg8[%c0_16, %c0_17, %c0_18], %19 {strides = array<i32>} : memref<1x8x256xf32, #tpu.memory_space<vmem>>, vector<1x8x256xf32>,
    return
  }
  func.func @transform_0(%arg0: i32, %arg1: i32) -> (i32, i32, i32) {
    %c0_i32 = arith.constant 0 : i32
    %c0_i32_0 = arith.constant 0 : i32
    return %arg0, %c0_i32, %arg1 : i32, i32, i32
  }
  func.func @transform_1(%arg0: i32, %arg1: i32) -> (i32, i32, i32) {
    %c0_i32 = arith.constant 0 : i32
    %c0_i32_0 = arith.constant 0 : i32
    return %arg0, %c0_i32, %arg1 : i32, i32, i32
  }
  func.func @transform_2(%arg0: i32, %arg1: i32) -> (i32, i32, i32) {
    %c0_i32 = arith.constant 0 : i32
    %c0_i32_0 = arith.constant 0 : i32
    return %arg0, %c0_i32, %arg1 : i32, i32, i32
  }
  func.func @transform_3(%arg0: i32, %arg1: i32) -> (i32, i32) {
    %c0_i32 = arith.constant 0 : i32
    %c0_i32_0 = arith.constant 0 : i32
    %c0_i32_1 = arith.constant 0 : i32
    return %c0_i32, %c0_i32_0 : i32, i32
  }
  func.func @transform_4(%arg0: i32, %arg1: i32) -> (i32, i32) {
    %c0_i32 = arith.constant 0 : i32
    %c0_i32_0 = arith.constant 0 : i32
    %c0_i32_1 = arith.constant 0 : i32
    return %c0_i32, %c0_i32_0 : i32, i32
  }
  func.func @transform_5(%arg0: i32, %arg1: i32) -> (i32, i32) {
    %c0_i32 = arith.constant 0 : i32
    %c0_i32_0 = arith.constant 0 : i32
    %c0_i32_1 = arith.constant 0 : i32
    return %c0_i32, %c0_i32_0 : i32, i32
  }
  func.func @transform_6(%arg0: i32, %arg1: i32) -> (i32, i32, i32) {
    %c0_i32 = arith.constant 0 : i32
    %c0_i32_0 = arith.constant 0 : i32
    return %arg0, %c0_i32, %arg1 : i32, i32, i32
  }
}

</mosaic_0001>

<bundles_post_ra>
// kernel: tpu_custom_call.1
= control target key start
LH: loop header
LB: loop body
LE: loop exit
PB: predicated region body
PF: predicated region fallthrough
CT: control target
= control target key end

     0   :  { %s1315_s0 = inlined_call_operand.hbm [shape: f32[2,8,256], index: 0, kind: input, shape index: {}]   ;;  %s1316_s1 = inlined_call_operand.hbm [shape: f32[2,8,256], index: 1, kind: input, shape index: {}]   ;;  %s1317_s2 = inlined_call_operand.hbm [shape: f32[2,16,256], index: 2, kind: input, shape index: {}]   ;;  %s1318_s3 = inlined_call_operand.vmem [shape: f32[8,8], index: 3, kind: input, shape index: {}]   ;;  %s1319_s4 = inlined_call_operand.vmem [shape: f32[8,16], index: 4, kind: input, shape index: {}]   ;;  %s1320_s5 = inlined_call_operand.vmem [shape: f32[8,1], index: 5, kind: input, shape index: {}]   ;;  %s1321_s6 = inlined_call_operand.hbm [shape: f32[2,8,256], index: 6, kind: output, shape index: {}]  }
   0x1   :  { %1332 = sst [smem:[#allocation18_spill]] %s1316_s1 }
   0x2   :  { %11 = vsyncpa [#allocation3], 0 }
   0x3   :  { %13 = vsyncpa [#allocation3 + $0x1], 0 }
   0x4   :  { %14 = vsyncpa [#allocation6], 0 }
   0x5   :  { %16 = vsyncpa [#allocation6 + $0x1], 0 }
   0x6   :  { %17 = vsyncpa [#allocation4], 0 }
   0x7   :  { %19 = vsyncpa [#allocation4 + $0x1], 0  ;;  %s1034_s21 = smov 0   ;;  %s1036_s22 = smov 0  }
   0x8   :  { %s1038_s23 = smov 0   ;;  %s1040_s24 = smov 0  }
   0x9   :  { %s1042_s25 = smov 0   ;;  %s1044_s26 = smov 0  }
   0xa LB: > { %1333 = sst [smem:[#allocation12_spill]] %s969_s21  ;;  %s1065_s27 = sadd.s32 4294967295, %s989_s26   ;;  %s989_s26 = sphi %s1044_s26, %s25_s26   ;;  %s985_s25 = sphi %s1042_s25, %s1363_s25   ;;  %s981_s24 = sphi %s1040_s24, %s1362_s24   ;;  %s977_s23 = sphi %s1038_s23, %s1358_s23   ;;  %s973_s22 = sphi %s1036_s22, %s1361_s22   ;;  %s969_s21 = sphi %s1034_s21, %s1360_s21  }
   0xb   : > { %1334 = sst [smem:[#allocation13_spill]] %s977_s23  ;;  %s700_s28 = sadd.s32 4294967294, %s989_s26  }
   0xc   : > { %1335 = sst [smem:[#allocation14_spill]] %s989_s26  ;;  %s37_s29 = sadd.s32 1, %s985_s25 }
   0xd   : > { %s46_s30 = sadd.s32 1, %s977_s23  ;;  %p39_p0 = scmp.ge.s32.totalorder %s37_s29, 2 }
   0xe   : > { %p53_p1 = scmp.ne.s32.totalorder %s977_s23, %s973_s22  ;;  %p54_p2 = scmp.eq.s32.totalorder %s989_s26, 0 }
   0xf   : > { %p59_p3 = scmp.ne.s32.totalorder %s973_s22, %s969_s21  ;;  %s1365_s29 = smov (%p39_p0, %s37_s29), 0 }
  0x10   : > { %1336 = sst [smem:[#allocation15_spill]] %s1365_s29  ;;  %p1077_p4 = por %p54_p2, %p53_p1 }
  0x11   : > { %p60_p5 = scmp.eq.s32.totalorder %s1065_s27, 0  ;;  %s41_s8 = ssub.s32 %s985_s25, %s1365_s29 }
  0x12   : > { %p204_p6 = scmp.eq.s32.totalorder %s1065_s27, 1  ;;  %p44_p7 = scmp.eq.s32.totalorder %s41_s8, 0 }
  0x13   : > { %p1085_p8 = por %p60_p5, %p59_p3  ;;  %p210_p10 = scmp.eq.s32.totalorder %s700_s28, 1 }
  0x14   : > { %p1089_p9 = por %p204_p6, %p53_p1  ;;  %p758_p13 = scmp.lt.s32.totalorder %s989_s26, 2 }
  0x15   : > { %s1338_s9 = scalar_select %p1085_p8, 1, 0 }
  0x16   : > { %s1339_s10 = scalar_select %p1089_p9, 1, 0 }
  0x17   : > { %s1094_s11 = scalar_select %p44_p7, %s977_s23, %s46_s30  }
  0x18   : > { %p1096_p11 = por %p210_p10, %p59_p3  ;;  %s1103_s13 = sand.u32 1, %s977_s23  }
  0x19   : > { %1340 = sst [smem:[#allocation16_spill]] %s1094_s11  ;;  %s1323_s14 = sshll.u32 %s1103_s13, 4 }
  0x1a   : > { %s1341_s12 = scalar_select %p1096_p11, 1, 0 }
  0x1b   : > { %s1324_s15 = sshll.u32 %s985_s25, 8  ;;  %p1109_p0 = pnand %p758_p13, %p1077_p4 }
  0x1c   : > { %1342 = sst [smem:[#allocation17_spill]] %s1341_s12  ;;  %s260_s17 = sand.u32 1, %s989_s26  }
  0x1d   : > { %s1344_s1 = sld [smem:[#allocation18_spill]]  ;;  %s264_s28 = scalar_lea.vmem [#allocation5], %s1323_s14 }
  0x1e   : > { %s274_s30 = sshll.u32 %s264_s28, 4  ;;  %s709_s7 = sshll.u32 %s1103_s13, 5  ;;  %s1124_s30 = int_to_ptr.vmem [resolvable:$true] %s274_s30 }
  0x1f   : > { %s1126_s8 = scalar_lea.sflag [#allocation6], %s260_s17  ;;  %p1132_p2 = pneg %p1109_p0 }
  0x23   : > { %s1119_s20 = scalar_lea.hbm %s1344_s1, %s1324_s15  ;;  %s818_s28 = scalar_lea.hbm %s1344_s1, 512 }
  0x24   : > { %s813_s29 = scalar_lea.hbm %s1119_s20, 256  ;;  %p819_p5 = scmp.lt.u32.totalorder %s1119_s20, %s1344_s1 }
  0x25   : > { %p814_p1 = scmp.ne.s32.totalorder %s1119_s20, %s813_s29  ;;  %p820_p6 = scmp.lt.u32.totalorder %s818_s28, %s813_s29 }
  0x26   : > { %p822_p10 = scmp.lt.u32.totalorder %s813_s29, %s1119_s20 }
  0x27   : > { %p816_p3 = pnand %p1132_p2, %p814_p1  ;;  %p821_p7 = por %p820_p6, %p819_p5 }
  0x29   : > { %p817_p4 = pneg %p816_p3  ;;  %p823_p13 = por %p822_p10, %p821_p7 }
  0x2b   : > { %p824_p12 = pnand %p823_p13, %p817_p4 }
  0x2d   : > { %827 = shalt.err (!%p824_p12)
}
  0x2e   : > { %s828_s17 = scalar_lea.vmem %s1124_s30, 256  ;;  %s991_s18 = smov [#allocation5]  }
  0x2f   : > { %p829_p1 = scmp.ne.s32.totalorder %s1124_s30, %s828_s17  ;;  %s833_s19 = sshll.u32 %s991_s18, 4  ;;  %s834_s19 = int_to_ptr.vmem [resolvable:$false] %s833_s19 }
  0x30   : > { %s835_s14 = scalar_lea.vmem %s834_s19, 512  ;;  %p836_p9 = scmp.lt.s32.totalorder %s1124_s30, %s834_s19 }
  0x31   : > { %p831_p3 = pnand %p829_p1, %p1132_p2  ;;  %p837_p8 = scmp.lt.s32.totalorder %s835_s14, %s828_s17 }
  0x33   : > { %p832_p11 = pneg %p831_p3  ;;  %p838_p5 = por %p837_p8, %p836_p9 }
  0x35   : > { %p839_p6 = pnand %p838_p5, %p832_p11 }
  0x37   : > { %842 = shalt.err (!%p839_p6)
}
  0x38   : > { %750 = dma.hbm_to_vmem [thread:$0]  (!%p1109_p0), %s1119_s20, 256, %s1124_s30, %s1126_s8  }
  0x39   : > { %s285_s29 = scalar_lea.vmem [#allocation7], %s709_s7  ;;  %p712_p8 = scmp.ge.s32.totalorder %s989_s26, 1 }
  0x3a   : > { %s294_s15 = sshll.u32 %s285_s29, 4  ;;  %p302_p9 = scmp.lt.s32.totalorder %s989_s26, 3  ;;  %s1159_s15 = int_to_ptr.vmem [resolvable:$true] %s294_s15 }
  0x3b   : > { %s1347_s17 = sshll.u32 %s985_s25, 8  ;;  %s1348_s1 = sshll.u32 %s1103_s13, 4 }
  0x3c   : > { %p1162_p11 = pnand %p712_p8, %p302_p9  ;;  %s1171_s14 = scalar_lea.hbm %s1315_s0, %s1347_s17 }
  0x3d   : > { %s243_s20 = scalar_lea.vmem [#allocation2], %s1348_s1  ;;  %s726_s7 = sshll.u32 %s985_s25, 9 }
  0x3e   : > { %s1346_s28 = scalar_select %p1162_p11, 1, 0 }
  0x3f   : > { %s253_s30 = sshll.u32 %s243_s20, 4  ;;  %s1181_s26 = scalar_lea.hbm %s1317_s2, %s726_s7  ;;  %s1176_s30 = int_to_ptr.vmem [resolvable:$true] %s253_s30 }
  0x40   : > { %s240_s12 = scalar_lea.sflag [#allocation3], %s1103_s13  ;;  %s843_s21 = scalar_lea.hbm %s1171_s14, 256 }
  0x41   : > { %p844_p12 = scmp.ne.s32.totalorder %s1171_s14, %s843_s21  ;;  %s848_s19 = scalar_lea.hbm %s1315_s0, 512 }
  0x42   : > { %p849_p10 = scmp.lt.u32.totalorder %s1171_s14, %s1315_s0  ;;  %p850_p13 = scmp.lt.u32.totalorder %s848_s19, %s843_s21 }
  0x43   : > { %p846_p4 = pnand %p844_p12, %p1132_p2  ;;  %p852_p3 = scmp.lt.u32.totalorder %s843_s21, %s1171_s14 }
  0x44   : > { %p851_p1 = por %p850_p13, %p849_p10 }
  0x45   : > { %p847_p7 = pneg %p846_p4 }
  0x46   : > { %p853_p5 = por %p852_p3, %p851_p1 }
  0x48   : > { %p854_p6 = pnand %p853_p5, %p847_p7 }
  0x4a   : > { %857 = shalt.err (!%p854_p6)
}
  0x4b   : > { %s858_s23 = scalar_lea.vmem %s1176_s30, 256  ;;  %s992_s13 = smov [#allocation2]  }
  0x4c   : > { %p859_p8 = scmp.ne.s32.totalorder %s1176_s30, %s858_s23  ;;  %s863_s7 = sshll.u32 %s992_s13, 4  ;;  %s864_s7 = int_to_ptr.vmem [resolvable:$false] %s863_s7 }
  0x4d   : > { %s865_s29 = scalar_lea.vmem %s864_s7, 512  ;;  %p866_p4 = scmp.lt.s32.totalorder %s1176_s30, %s864_s7 }
  0x4e   : > { %p861_p9 = pnand %p859_p8, %p1132_p2  ;;  %p867_p11 = scmp.lt.s32.totalorder %s865_s29, %s858_s23 }
  0x50   : > { %p862_p12 = pneg %p861_p9  ;;  %p868_p10 = por %p867_p11, %p866_p4 }
  0x52   : > { %p869_p13 = pnand %p868_p10, %p862_p12 }
  0x54   : > { %872 = shalt.err (!%p869_p13)
}
  0x55   : > { %747 = dma.hbm_to_vmem [thread:$0]  (!%p1109_p0), %s1171_s14, 256, %s1176_s30, %s240_s12  }
  0x56   : > { %s873_s21 = scalar_lea.hbm %s1181_s26, 512  ;;  %s878_s19 = scalar_lea.hbm %s1317_s2, 1024 }
  0x57   : > { %p874_p7 = scmp.ne.s32.totalorder %s1181_s26, %s873_s21  ;;  %p879_p11 = scmp.lt.u32.totalorder %s1181_s26, %s1317_s2 }
  0x58   : > { %p880_p5 = scmp.lt.u32.totalorder %s878_s19, %s873_s21  ;;  %p882_p8 = scmp.lt.u32.totalorder %s873_s21, %s1181_s26 }
  0x59   : > { %p876_p1 = pnand %p874_p7, %p1132_p2 }
  0x5a   : > { %p881_p6 = por %p880_p5, %p879_p11 }
  0x5b   : > { %p877_p3 = pneg %p876_p1 }
  0x5c   : > { %p883_p9 = por %p882_p8, %p881_p6 }
  0x5e   : > { %p884_p12 = pnand %p883_p9, %p877_p3 }
  0x60   : > { %887 = shalt.err (!%p884_p12)
}
  0x61   : > { %s888_s12 = scalar_lea.vmem %s1159_s15, 512  ;;  %s993_s14 = smov [#allocation7]  }
  0x62   : > { %p889_p4 = scmp.ne.s32.totalorder %s1159_s15, %s888_s12  ;;  %s893_s30 = sshll.u32 %s993_s14, 4  ;;  %s894_s30 = int_to_ptr.vmem [resolvable:$false] %s893_s30 }
  0x63   : > { %s895_s23 = scalar_lea.vmem %s894_s30, 1024  ;;  %p896_p7 = scmp.lt.s32.totalorder %s1159_s15, %s894_s30 }
  0x64   : > { %p891_p10 = pnand %p889_p4, %p1132_p2  ;;  %p897_p1 = scmp.lt.s32.totalorder %s895_s23, %s888_s12 }
  0x66   : > { %p892_p13 = pneg %p891_p10  ;;  %p898_p11 = por %p897_p1, %p896_p7 }
  0x68   : > { %p899_p5 = pnand %p898_p11, %p892_p13 }
  0x6a   : > { %902 = shalt.err (!%p899_p5)
}
  0x6b   : > { %s994_s13 = smov 256   ;;  %s995_s7 = smov 16  }
  0x6c   : > { %753 = dma.hbm_to_vmem [thread:$0]  (!%p1109_p0), %s1181_s26, 512, %s1159_s15, %s1126_s8, %s994_s13, %s994_s13, %s995_s7  }
  0x6d   : > { %p1349_p2 = scmp.ne.s32.totalorder %s1346_s28, 0 }
  0x6e   : > { %s1230_s11 = sand.u32 (!%p1349_p2), 1, %s973_s22   ;;  %p1350_p3 = scmp.ne.s32.totalorder (!%p1349_p2), %s1338_s9, 0 }
  0x6f   : > { %306 = sbr.rel (%p1349_p2) target bundleno = 362 (0x16a), region = 44  ;;  %s1233_s29 = sshll.u32 (!%p1349_p2), %s1230_s11, 4 }
  0x70   : > { %s309_s21 = scalar_lea.sflag (!%p1349_p2), [#allocation3], %s1230_s11  ;;  %s312_s17 = scalar_lea.vmem (!%p1349_p2), [#allocation2], %s1233_s29 }
  0x76   : > { %956 = dma.done.wait (%p1350_p3), %s309_s21, 256  }
  0x77   : > { %958 = vsyncadd (%p1350_p3), %s309_s21, 4294967040  ;;  %s317_s26 = sand.u32 1, %s1065_s27   ;;  %s321_s8 = scalar_lea.vmem [#allocation5], %s1233_s29 }
  0x78   : > { %s318_s16 = scalar_lea.sflag [#allocation6], %s317_s26 }
  0x79   : > { %960 = dma.done.wait (%p1350_p3), %s318_s16, 768  }
  0x7a   : > { %962 = vsyncadd (%p1350_p3), %s318_s16, 4294966528  ;;  %v996_v0 = vmov 0.0   ;;  %s715_s15 = sshll.u32 %s1230_s11, 5  ;;  %v997_v1 = vmov 0   ;;  %v379_v2 = vld [vmem:[%s321_s8 + $0x8] sm:$0xff]  ;;  %v378_v3 = vld [vmem:[%s321_s8] sm:$0xff] }
  0x7b   : > { %448 = vmatprep.mubr.f32.mxu1 %v996_v0  ;;  %530 = vmatprep.mubr.f32.mxu0 %v996_v0  ;;  %s330_s28 = scalar_lea.vmem [#allocation7], %s715_s15  ;;  %vm380_vm0 = vcmask 64512   ;;  %v377_v6 = vld [vmem:[%s1318_s3] sm:$0xff]  ;;  %vm462_vm1 = vcmask 130048   ;;  %v374_v14 = vld [vmem:[%s312_s17 + $0x8] sm:$0xff]  ;;  %s727_s12 = sshll.u32 %s981_s24, 8 }
  0x7c   : > { %812 = vset.pattern.permute.xlu0 %v997_v1  ;;  %v459_v4 = vld [vmem:[%s330_s28 + $0x8] sm:$0xff]  ;;  %384 = vmatprep.subr.mxu1 %v379_v2  ;;  %v461_v5 = vld [vmem:[%s330_s28 + $0x18] sm:$0xff]  ;;  %v458_v7 = vld [vmem:[%s330_s28] sm:$0xff]  ;;  %v376_v16 = vmul.f32 0.33333334, %v374_v14  ;;  %s368_s14 = scalar_lea.vmem [#allocation8], %s1233_s29  ;;  %s1266_s7 = scalar_lea.hbm %s1321_s6, %s727_s12 }
  0x7d   : > { %385 = vmatpush1.msra.mxu1 %v378_v3  ;;  %v728_v8 = vpack.c.bf16 %v461_v5, %v459_v4  ;;  %v460_v9 = vld [vmem:[%s330_s28 + $0x10] sm:$0xff]  ;;  %v539_v10 = vld [vmem:[%s1320_s5] sm:$0xff]  ;;  %s566_s30 = sshll.u32 %s368_s14, 4  ;;  %s550_s21 = scalar_lea.sflag [#allocation4], %s1230_s11  ;;  %s1268_s30 = int_to_ptr.vmem [resolvable:$true] %s566_s30 }
  0x7e   : > { %717 = vmatmul.mubr.msk.f32.vlgmr.msra.gmra.mrb[0].mxu1 %vm380_vm0, %v377_v6  ;;  %v730_v11 = vpack.c.bf16 %v460_v9, %v458_v7  ;;  %542 = vperm.xlu0 %812, %v539_v10   ;;  %v457_v12 = vld [vmem:[%s1319_s4] sm:$0xff]  ;;  %p1351_p6 = scmp.ne.s32.totalorder %s1339_s10, 0  ;;  %s998_s24 = smov [#allocation8]  }
  0x7f   : > { %729 = vmatprep.subr.bf16.mxu0 %v728_v8  ;;  %v373_v13 = vld [vmem:[%s312_s17] sm:$0xff]  ;;  %s903_s17 = scalar_lea.vmem %s1268_s30, 256  ;;  %s907_s29 = sshll.u32 %s998_s24, 4  ;;  %s908_s29 = int_to_ptr.vmem [resolvable:$false] %s907_s29 }
  0x80   : > { %731 = vmatpush1.bf16.msra.mxu0 %v730_v11  ;;  %v375_v15 = vmul.f32 0.33333334, %v373_v13  ;;  %p904_p0 = scmp.ne.s32.totalorder %s1268_s30, %s903_s17  ;;  %s909_s26 = scalar_lea.vmem %s908_s29, 512 }
  0x81   : > { %p910_p12 = scmp.lt.s32.totalorder %s1268_s30, %s908_s29  ;;  %p911_p4 = scmp.lt.s32.totalorder %s909_s26, %s903_s17 }
  0x82   : > { %p905_p8 = pnand %p904_p0, %p1351_p6 }
  0x83   : > { %718 = vmatmul.mubr.msk.f32.vlgmr.msra.gmra.mrb[0].mxu0 %vm462_vm1, %v457_v12  ;;  %p912_p10 = por %p911_p4, %p910_p12 }
  0x84   : > { %p906_p9 = pneg %p905_p8 }
  0x86   : > { %p913_p13 = pnand %p912_p10, %p906_p9 }
  0xfd   : > { %v543_v22 = vpop.permute.xlu0 %542 }
 0x151   : > { %v450_v17 = vpop.f32.mrb[0].mxu1 }
 0x152   : > { %v452_v18 = vpop.f32.mrb[1].mxu1  ;;  %v455_v19 = vadd.f32 %v450_v17, %v375_v15 }
 0x153   : > { %v456_v20 = vadd.f32 %v452_v18, %v376_v16 }
 0x156   : > { %v532_v21 = vpop.f32.mrb[0].mxu0 }
 0x157   : > { %v537_v23 = vadd.f32 %v532_v21, %v455_v19  ;;  %v534_v24 = vpop.f32.mrb[1].mxu0 }
 0x158   : > { %v538_v25 = vadd.f32 %v534_v24, %v456_v20 }
 0x159   : > { %v545_v26 = vadd.f32 %v543_v22, %v537_v23 }
 0x15a   : > { %v546_v27 = vadd.f32 %v543_v22, %v538_v25 }
 0x15b   : > { %547 = vst [vmem:[%s368_s14] sm:$0xff] %v545_v26 }
 0x15c   : > { %548 = vst [vmem:[%s368_s14 + $0x8] sm:$0xff] %v546_v27 }
 0x15d   : > { %916 = shalt.err (!%p913_p13)
}
 0x15e   : > { %s917_s11 = scalar_lea.hbm %s1266_s7, 256  ;;  %s921_s15 = scalar_lea.hbm %s1321_s6, 512 }
 0x15f   : > { %p918_p7 = scmp.ne.s32.totalorder %s1266_s7, %s917_s11  ;;  %p922_p5 = scmp.lt.u32.totalorder %s1266_s7, %s1321_s6 }
 0x160   : > { %p923_p2 = scmp.lt.u32.totalorder %s921_s15, %s917_s11  ;;  %p925_p0 = scmp.lt.u32.totalorder %s917_s11, %s1266_s7 }
 0x161   : > { %p919_p1 = pnand %p918_p7, %p1351_p6 }
 0x162   : > { %p924_p3 = por %p923_p2, %p922_p5 }
 0x163   : > { %p920_p11 = pneg %p919_p1 }
 0x164   : > { %p926_p8 = por %p925_p0, %p924_p3 }
 0x166   : > { %p927_p9 = pnand %p926_p8, %p920_p11 }
 0x168   : > { %930 = shalt.err (!%p927_p9)
}
 0x169   : > { %742 = dma.vmem_to_hbm [thread:$0]  (%p1351_p6), %s1268_s30, 256, %s1266_s7, %s550_s21  }
 0x16a PF: > { %s1352_s18 = sld [smem:[#allocation12_spill]]  ;;  %s1353_s9 = sld [smem:[#allocation17_spill]] }
 0x16b   : > { %s1354_s19 = sld [smem:[#allocation14_spill]] }
 0x170   : > { %s578_s1 = sand.u32 1, %s1352_s18   ;;  %p1355_p12 = scmp.ne.s32.totalorder %s1353_s9, 0 }
 0x171   : > { %p1356_p4 = scmp.ge.s32.totalorder %s1354_s19, 2  ;;  %s579_s20 = scalar_lea.sflag [#allocation4], %s578_s1 }
 0x173   : > { %p755_p10 = pnand %p1356_p4, %p1355_p12 }
 0x175   : > { %964 = dma.done.wait (!%p755_p10), %s579_s20, 256  }
 0x176   : > { %966 = vsyncadd (!%p755_p10), %s579_s20, 4294967040  ;;  %s25_s26 = sadd.s32 1, %s1354_s19   ;;  %s1357_s12 = sld [smem:[#allocation13_spill]] }
 0x177   : > { %p22_p13 = scmp.ge.s32.totalorder %s25_s26, 4   ;;  %s1358_s23 = sld [smem:[#allocation16_spill]] }
 0x178   : > { %s1359_s10 = sld [smem:[#allocation15_spill]]  ;;  %s1360_s21 = smov %s973_s22 }
 0x179   : > { %s1362_s24 = smov %s985_s25  ;;  %24 = sbr.rel (!%p22_p13) target bundleno = 10 (0xa), region = 113 }
 0x17c   : > { %s1361_s22 = smov %s1357_s12 }
 0x17e   : > { %s1363_s25 = smov %s1359_s10 }
 0x180   :  { %584 = vsyncpa [#allocation3], 1 }
 0x181   :  { %586 = vsyncpa [#allocation3 + $0x1], 1 }
 0x182   :  { %587 = vsyncpa [#allocation6], 1 }
 0x183   :  { %589 = vsyncpa [#allocation6 + $0x1], 1 }
 0x184   :  { %590 = vsyncpa [#allocation4], 1 }
 0x185   :  { %592 = vsyncpa [#allocation4 + $0x1], 1 }

</bundles_post_ra>
